<compile_context>
chip_gen: v7x
topology: tpu7x:2x2x1
jax: 0.10.0
libtpu: 0.0.40
codegen_flags: <defaults>
</compile_context>

<pallas_src>
import functools

import jax
import jax.numpy as jnp
import numpy as np
from jax.experimental import pallas as pl
from jax.experimental.pallas import tpu as pltpu


# --------------------------------------------------------------------------- #
# Fused single-pass kernel (whole per-sample image resident in VMEM)
# --------------------------------------------------------------------------- #
def _fused_kernel(x_ref, wt_ref, gmask_ref, gb_ref, o_ref, *, eps):
    # x_ref:     (1, C1, HW)   one full sample
    # wt_ref:    (C2, C1)      transposed 1x1 weight
    # gmask_ref: (C2, C2) f32  group-indicator / (cg*HW): row i has 1/(cg*HW) where
    #                          group(j) == group(i), else 0  -> (gmask @ v) broadcasts
    #                          the per-group mean of v back to per-channel.
    # gb_ref:    (C2, 2)  f32  [:,0]=gamma, [:,1]=beta
    # o_ref:     (1, C2, HW)
    # 1x1 transposed conv == matmul on the MXU, f32 accumulation
    y = jnp.dot(wt_ref[...], x_ref[0], preferred_element_type=jnp.float32)      # (C2, HW)

    # per-group mean, broadcast back to channels via the tiny indicator matmul
    ch_sum = jnp.sum(y, axis=1, keepdims=True)                                   # (C2, 1)
    mean_c = jnp.dot(gmask_ref[...], ch_sum, preferred_element_type=jnp.float32)  # (C2, 1)

    # numerically-stable centered variance
    d = y - mean_c                                                               # (C2, HW)
    ch_csq = jnp.sum(d * d, axis=1, keepdims=True)                               # (C2, 1)
    var_c = jnp.dot(gmask_ref[...], ch_csq, preferred_element_type=jnp.float32)  # (C2, 1)

    inv = jax.lax.rsqrt(var_c + eps)
    scale = inv * gb_ref[:, 0:1]            # gamma / sqrt(var+eps)
    yn = d * scale + gb_ref[:, 1:2]         # (y-mean)*scale + beta
    # SiLU (sigmoid's exp rides the EUP slot)
    o_ref[0] = (yn * jax.nn.sigmoid(yn)).astype(o_ref.dtype)


# --------------------------------------------------------------------------- #
# Two-pass fallback kernels (large HW: per-sample y does not fit VMEM)
# --------------------------------------------------------------------------- #
def _stats_kernel(x_ref, wt_ref, stat_ref):
    # x_ref:    (1, C1, HWt)   one HW tile of one batch element
    # wt_ref:   (C2, C1)
    # stat_ref: (1, C2, 2)     packed [sum, sum_of_squares], resident across the HW axis
    @pl.when(pl.program_id(1) == 0)
    def _():
        stat_ref[...] = jnp.zeros_like(stat_ref)

    y = jnp.dot(wt_ref[...], x_ref[0], preferred_element_type=jnp.float32)   # (C2, HWt)
    s = jnp.sum(y, axis=1, keepdims=True)                                     # (C2, 1)
    q = jnp.sum(y * y, axis=1, keepdims=True)                                 # (C2, 1)
    stat_ref[0] += jnp.concatenate([s, q], axis=1)                            # (C2, 2)


def _apply_kernel(x_ref, wt_ref, scale_ref, shift_ref, o_ref):
    # x_ref: (1, C1, HWt); wt_ref: (C2, C1); scale/shift: (1, C2, 1) f32; o_ref: (1, C2, HWt)
    y = jnp.dot(wt_ref[...], x_ref[0], preferred_element_type=jnp.float32)    # (C2, HWt)
    yn = y * scale_ref[0] + shift_ref[0]      # GroupNorm folded into per-channel affine
    o_ref[0] = (yn * jax.nn.sigmoid(yn)).astype(o_ref.dtype)


# --------------------------------------------------------------------------- #
# Wrapper
# --------------------------------------------------------------------------- #
def _vmem_capacity_bytes():
    """Physical VMEM per TensorCore; conservative default if the query fails."""
    try:
        cap = int(pltpu.get_tpu_info().vmem_capacity_bytes)
        if cap > 0:
            return cap
    except Exception:
        pass
    return 64 * 1024 * 1024  # v7x per-TC size: safe lower bound on all generations


def _pick_hw_tile(hw_pad, bytes_per_col, budget):
    """Largest HW tile that divides hw_pad (a multiple of 128) and fits the budget."""
    if hw_pad * bytes_per_col <= budget:
        return hw_pad
    t = max((budget // max(bytes_per_col, 1)) // 128 * 128, 128)
    while t >= 128:
        if hw_pad % t == 0:
            return t
        t -= 128
    return 128  # hw_pad is a multiple of 128, so 128 always divides it


def trans_conv_forward(x_nchw, weight, gamma, beta, *, num_groups, eps=1e-5,
                       out_dtype=None, force_two_pass=False):
    """x_nchw: (N, C1, H, W); weight: (C1, C2) (ConvTranspose2d weight (C1,C2,1,1) viewed);
    gamma, beta: (C2,). Returns (N, C2, H, W)."""
    N, C1, H, W = x_nchw.shape
    C1w, C2 = weight.shape
    assert C1w == C1
    assert C2 % num_groups == 0
    cg = C2 // num_groups
    HW = H * W
    if out_dtype is None:
        out_dtype = x_nchw.dtype
    out_dtype = jnp.dtype(out_dtype)

    # NCHW-native: (N, C1, H, W) -> (N, C1, HW) is a free reshape (no transpose, no copy)
    x = x_nchw.reshape(N, C1, HW)
    wt = jnp.transpose(weight).astype(x.dtype)     # (C2, C1); tiny, done once

    # generation-aware VMEM budget (64 MiB/TC on v7x, 128 MiB on v5e/v6e)
    phys_vmem = _vmem_capacity_bytes()
    budget = int(phys_vmem * 0.75)
    xb = x.dtype.itemsize
    ob = out_dtype.itemsize

    # ---------------- fused single-pass path ----------------
    # footprint: double-buffered x + out blocks, ~3 live f32 (C2,HW) intermediates,
    # small constants, plus slack.
    fused_bytes = (2 * C1 * HW * xb + 2 * C2 * HW * ob + 3 * C2 * HW * 4
                   + C2 * C1 * xb + C2 * C2 * 4 + C2 * 2 * 4) + (1 << 20)
    if not force_two_pass and fused_bytes <= budget:
        gidx = np.arange(C2) // cg
        gmask = jnp.asarray(
            (gidx[:, None] == gidx[None, :]).astype(np.float32) / float(cg * HW))
        gb = jnp.stack([gamma.astype(jnp.float32), beta.astype(jnp.float32)], axis=1)

        out_flat = pl.pallas_call(
            functools.partial(_fused_kernel, eps=eps),
            out_shape=jax.ShapeDtypeStruct((N, C2, HW), out_dtype),
            grid_spec=pltpu.PrefetchScalarGridSpec(
                num_scalar_prefetch=0,
                grid=(N,),
                in_specs=[
                    pl.BlockSpec((1, C1, HW), lambda n: (n, 0, 0)),
                    pl.BlockSpec((C2, C1), lambda n: (0, 0)),
                    pl.BlockSpec((C2, C2), lambda n: (0, 0)),
                    pl.BlockSpec((C2, 2), lambda n: (0, 0)),
                ],
                out_specs=pl.BlockSpec((1, C2, HW), lambda n: (n, 0, 0)),
            ),
            compiler_params=pltpu.CompilerParams(
                dimension_semantics=("parallel",),
                vmem_limit_bytes=budget),
        )(x, wt, gmask, gb)
        return out_flat.reshape(N, C2, H, W)

    # ---------------- two-pass fallback (large HW) ----------------
    # Pad HW to a multiple of 128: zero columns keep all stores unmasked/lane-dense and
    # contribute 0 to both sum and sum-of-squares, so stats stay exact with the true count.
    HW_pad = ((HW + 127) // 128) * 128
    xp = x if HW_pad == HW else jnp.pad(x, ((0, 0), (0, 0), (0, HW_pad - HW)))

    per_col = 2 * C1 * xb + 2 * C2 * ob + 2 * C2 * 4
    hw_tile = _pick_hw_tile(HW_pad, per_col, budget)
    num_tiles = HW_pad // hw_tile

    # pass 1: per-channel [sum, sum_sq] of the 1x1-conv output, packed into one array
    stats = pl.pallas_call(
        _stats_kernel,
        out_shape=jax.ShapeDtypeStruct((N, C2, 2), jnp.float32),
        grid_spec=pltpu.PrefetchScalarGridSpec(
            num_scalar_prefetch=0,
            grid=(N, num_tiles),
            in_specs=[
                pl.BlockSpec((1, C1, hw_tile), lambda n, t: (n, 0, t)),
                pl.BlockSpec((C2, C1), lambda n, t: (0, 0)),
            ],
            out_specs=pl.BlockSpec((1, C2, 2), lambda n, t: (n, 0, 0)),
        ),
        compiler_params=pltpu.CompilerParams(
            dimension_semantics=("parallel", "arbitrary"),
            vmem_limit_bytes=budget),
    )(xp, wt)

    # tiny host-side group reduction; fold GroupNorm into a per-channel affine
    cnt = float(HW * cg)                           # true element count (padding is zero)
    g_sum = stats[:, :, 0].reshape(N, num_groups, cg).sum(axis=2)   # (N, G)
    g_sq = stats[:, :, 1].reshape(N, num_groups, cg).sum(axis=2)    # (N, G)
    mean = g_sum / cnt
    var = jnp.maximum(g_sq / cnt - mean * mean, 0.0)   # biased variance (PyTorch GroupNorm)
    inv = jax.lax.rsqrt(var + eps)
    inv_c = jnp.repeat(inv, cg, axis=1)            # (N, C2)
    mean_c = jnp.repeat(mean, cg, axis=1)          # (N, C2)
    g32 = gamma.astype(jnp.float32)[None, :]
    b32 = beta.astype(jnp.float32)[None, :]
    scale = (inv_c * g32).reshape(N, C2, 1)
    shift = (b32 - mean_c * inv_c * g32).reshape(N, C2, 1)

    # pass 2: recompute the cheap K=C1 conv tile, apply affine + SiLU, lane-dense store
    out_flat = pl.pallas_call(
        _apply_kernel,
        out_shape=jax.ShapeDtypeStruct((N, C2, HW_pad), out_dtype),
        grid_spec=pltpu.PrefetchScalarGridSpec(
            num_scalar_prefetch=0,
            grid=(N, num_tiles),
            in_specs=[
                pl.BlockSpec((1, C1, hw_tile), lambda n, t: (n, 0, t)),
                pl.BlockSpec((C2, C1), lambda n, t: (0, 0)),
                pl.BlockSpec((1, C2, 1), lambda n, t: (n, 0, 0)),
                pl.BlockSpec((1, C2, 1), lambda n, t: (n, 0, 0)),
            ],
            out_specs=pl.BlockSpec((1, C2, hw_tile), lambda n, t: (n, 0, t)),
        ),
        compiler_params=pltpu.CompilerParams(
            dimension_semantics=("parallel", "parallel"),
            vmem_limit_bytes=budget),
    )(xp, wt, scale, shift)

    if HW_pad != HW:
        out_flat = out_flat[:, :, :HW]
    return out_flat.reshape(N, C2, H, W)


def trans_conv_reference(x_nchw, weight, gamma, beta, *, num_groups, eps=1e-5):
    """Pure-JAX reference mirroring PyTorch semantics."""
    N, C1, H, W = x_nchw.shape
    C2 = weight.shape[1]
    cg = C2 // num_groups
    # ConvTranspose2d k=1,s=1,p=0: out[n,o,h,w] = sum_i x[n,i,h,w] * W[i,o]
    y = jnp.einsum("nihw,io->nohw", x_nchw, weight)
    # GroupNorm
    yg = y.reshape(N, num_groups, cg, H, W)
    mean = yg.mean(axis=(2, 3, 4), keepdims=True)
    var = yg.var(axis=(2, 3, 4), keepdims=True)
    yn = ((yg - mean) / jnp.sqrt(var + eps)).reshape(N, C2, H, W)
    yn = yn * gamma.reshape(1, C2, 1, 1) + beta.reshape(1, C2, 1, 1)
    # SiLU
    return yn * jax.nn.sigmoid(yn)


if __name__ == "__main__":
    key = jax.random.PRNGKey(0)
    k_x, k_w, k_g, k_b, k_x2 = jax.random.split(key, 5)

    # TransConv(c1=4, c2=32) with default k=1, s=1 -> GroupNorm(min(32,32)=32, 32) -> SiLU
    N, C1, C2, H, W = 2, 4, 32, 16, 16
    num_groups = min(32, C2)

    x = jax.random.normal(k_x, (N, C1, H, W), dtype=jnp.float32)
    # ConvTranspose2d weight has shape (c1, c2, 1, 1); we use the (c1, c2) view directly.
    weight = jax.random.normal(k_w, (C1, C2), dtype=jnp.float32) * 0.2
    gamma = 1.0 + 0.1 * jax.random.normal(k_g, (C2,), dtype=jnp.float32)
    beta = 0.1 * jax.random.normal(k_b, (C2,), dtype=jnp.float32)

    # --- fused single-pass path ---
    out = trans_conv_forward(x, weight, gamma, beta, num_groups=num_groups)
    out = jax.block_until_ready(out)
    ref = jax.block_until_ready(
        trans_conv_reference(x, weight, gamma, beta, num_groups=num_groups))
    np.testing.assert_allclose(np.asarray(out), np.asarray(ref), rtol=1e-3, atol=1e-3)

    # --- two-pass fallback path (forced), ragged HW=144 exercises the 128-padding ---
    H2 = W2 = 12
    x2 = jax.random.normal(k_x2, (N, C1, H2, W2), dtype=jnp.float32)
    out2 = trans_conv_forward(x2, weight, gamma, beta, num_groups=num_groups,
                              force_two_pass=True)
    out2 = jax.block_until_ready(out2)
    ref2 = jax.block_until_ready(
        trans_conv_reference(x2, weight, gamma, beta, num_groups=num_groups))
    np.testing.assert_allclose(np.asarray(out2), np.asarray(ref2), rtol=1e-3, atol=1e-3)

    print("KERNEL_OK")
</pallas_src>

<mosaic_0001>
module attributes {stable_mosaic.version = 11 : i64} {
  func.func @_fused_kernel(%arg0: i32, %arg1: memref<1x4x256xf32, #tpu.memory_space<vmem>>, %arg2: memref<32x4xf32, #tpu.memory_space<vmem>>, %arg3: memref<32x32xf32, #tpu.memory_space<vmem>>, %arg4: memref<32x2xf32, #tpu.memory_space<vmem>>, %arg5: memref<1x32x256xf32, #tpu.memory_space<vmem>>) attributes {dimension_semantics = [#tpu.dimension_semantics<parallel>], iteration_bounds = array<i64: 2>, scalar_prefetch = 0 : i64, scratch_operands = 0 : i64, tpu.core_type = #tpu.core_type<tc>, window_params = [{transform_indices = @transform_0, window_bounds = array<i64: 1, 4, 256>}, {pipeline_mode = #tpu.pipeline_mode<synchronous>, transform_indices = @transform_1, window_bounds = array<i64: 32, 4>}, {pipeline_mode = #tpu.pipeline_mode<synchronous>, transform_indices = @transform_2, window_bounds = array<i64: 32, 32>}, {pipeline_mode = #tpu.pipeline_mode<synchronous>, transform_indices = @transform_3, window_bounds = array<i64: 32, 2>}, {transform_indices = @transform_4, window_bounds = array<i64: 1, 32, 256>}]} {
    %c0 = arith.constant 0 : index
    %c0_0 = arith.constant 0 : index
    %0 = vector.load %arg2[%c0, %c0_0] : memref<32x4xf32, #tpu.memory_space<vmem>>, vector<32x4xf32>
    %c0_1 = arith.constant 0 : index
    %c0_2 = arith.constant 0 : index
    %c0_3 = arith.constant 0 : index
    %1 = vector.load %arg1[%c0_1, %c0_2, %c0_3] : memref<1x4x256xf32, #tpu.memory_space<vmem>>, vector<1x4x256xf32>
    %2 = vector.shape_cast %1 : vector<1x4x256xf32> to vector<4x256xf32>
    %cst = arith.constant dense<0.000000e+00> : vector<32x256xf32>
    %3 = tpu.matmul %0, %2, %cst {dimension_numbers = #tpu.dot_dimension_numbers<[1], [0], [0], [1], [0, 0, 1, 1], [], []>} : vector<32x4xf32>, vector<4x256xf32>, vector<32x256xf32> -> vector<32x256xf32>
    %cst_4 = arith.constant dense<0.000000e+00> : vector<32xf32>
    %4 = vector.multi_reduction <add>, %3, %cst_4 [1] : vector<32x256xf32> to vector<32xf32>
    %5 = vector.shape_cast %4 : vector<32xf32> to vector<32x1xf32>
    %c0_5 = arith.constant 0 : index
    %c0_6 = arith.constant 0 : index
    %6 = vector.load %arg3[%c0_5, %c0_6] : memref<32x32xf32, #tpu.memory_space<vmem>>, vector<32x32xf32>
    %cst_7 = arith.constant dense<0.000000e+00> : vector<32x1xf32>
    %7 = tpu.matmul %6, %5, %cst_7 {dimension_numbers = #tpu.dot_dimension_numbers<[1], [0], [0], [1], [0, 0, 1, 1], [], []>} : vector<32x32xf32>, vector<32x1xf32>, vector<32x1xf32> -> vector<32x1xf32>
    %8 = vector.broadcast %7 : vector<32x1xf32> to vector<32x256xf32>
    %9 = arith.subf %3, %8 : vector<32x256xf32>
    %10 = arith.mulf %9, %9 : vector<32x256xf32>
    %cst_8 = arith.constant dense<0.000000e+00> : vector<32xf32>
    %11 = vector.multi_reduction <add>, %10, %cst_8 [1] : vector<32x256xf32> to vector<32xf32>
    %12 = vector.shape_cast %11 : vector<32xf32> to vector<32x1xf32>
    %c0_9 = arith.constant 0 : index
    %c0_10 = arith.constant 0 : index
    %13 = vector.load %arg3[%c0_9, %c0_10] : memref<32x32xf32, #tpu.memory_space<vmem>>, vector<32x32xf32>
    %cst_11 = arith.constant dense<0.000000e+00> : vector<32x1xf32>
    %14 = tpu.matmul %13, %12, %cst_11 {dimension_numbers = #tpu.dot_dimension_numbers<[1], [0], [0], [1], [0, 0, 1, 1], [], []>} : vector<32x32xf32>, vector<32x1xf32>, vector<32x1xf32> -> vector<32x1xf32>
    %cst_12 = arith.constant 9.99999974E-6 : f32
    %15 = vector.broadcast %cst_12 : f32 to vector<32x1xf32>
    %16 = arith.addf %14, %15 : vector<32x1xf32>
    %17 = math.rsqrt %16 : vector<32x1xf32>
    %c0_13 = arith.constant 0 : index
    %c0_14 = arith.constant 0 : index
    %18 = vector.load %arg4[%c0_13, %c0_14] : memref<32x2xf32, #tpu.memory_space<vmem>>, vector<32x1xf32>
    %19 = arith.mulf %17, %18 : vector<32x1xf32>
    %20 = vector.broadcast %19 : vector<32x1xf32> to vector<32x256xf32>
    %21 = arith.mulf %9, %20 : vector<32x256xf32>
    %c0_15 = arith.constant 0 : index
    %c1 = arith.constant 1 : index
    %22 = vector.load %arg4[%c0_15, %c1] : memref<32x2xf32, #tpu.memory_space<vmem>>, vector<32x1xf32>
    %23 = vector.broadcast %22 : vector<32x1xf32> to vector<32x256xf32>
    %24 = arith.addf %21, %23 : vector<32x256xf32>
    %25 = arith.negf %24 : vector<32x256xf32>
    %26 = math.exp %25 : vector<32x256xf32>
    %cst_16 = arith.constant 1.000000e+00 : f32
    %27 = vector.broadcast %cst_16 : f32 to vector<32x256xf32>
    %28 = arith.addf %27, %26 : vector<32x256xf32>
    %29 = arith.divf %27, %28 : vector<32x256xf32>
    %30 = arith.mulf %24, %29 : vector<32x256xf32>
    %c0_17 = arith.constant 0 : index
    %c0_18 = arith.constant 0 : index
    %c0_19 = arith.constant 0 : index
    %31 = vector.load %arg5[%c0_17, %c0_18, %c0_19] : memref<1x32x256xf32, #tpu.memory_space<vmem>>, vector<1x32x256xf32>
    %32 = vector.shape_cast %31 : vector<1x32x256xf32> to vector<32x256xf32>
    %33 = vector.shape_cast %30 : vector<32x256xf32> to vector<1x32x256xf32>
    tpu.vector_store %arg5[%c0_17, %c0_18, %c0_19], %33 {strides = array<i32>} : memref<1x32x256xf32, #tpu.memory_space<vmem>>, vector<1x32x256xf32>,
    return
  }
  func.func @transform_0(%arg0: i32) -> (i32, i32, i32) {
    %c0_i32 = arith.constant 0 : i32
    %c0_i32_0 = arith.constant 0 : i32
    %c0_i32_1 = arith.constant 0 : i32
    return %arg0, %c0_i32, %c0_i32_0 : i32, i32, i32
  }
  func.func @transform_1(%arg0: i32) -> (i32, i32) {
    %c0_i32 = arith.constant 0 : i32
    %c0_i32_0 = arith.constant 0 : i32
    %c0_i32_1 = arith.constant 0 : i32
    return %c0_i32, %c0_i32_0 : i32, i32
  }
  func.func @transform_2(%arg0: i32) -> (i32, i32) {
    %c0_i32 = arith.constant 0 : i32
    %c0_i32_0 = arith.constant 0 : i32
    %c0_i32_1 = arith.constant 0 : i32
    return %c0_i32, %c0_i32_0 : i32, i32
  }
  func.func @transform_3(%arg0: i32) -> (i32, i32) {
    %c0_i32 = arith.constant 0 : i32
    %c0_i32_0 = arith.constant 0 : i32
    %c0_i32_1 = arith.constant 0 : i32
    return %c0_i32, %c0_i32_0 : i32, i32
  }
  func.func @transform_4(%arg0: i32) -> (i32, i32, i32) {
    %c0_i32 = arith.constant 0 : i32
    %c0_i32_0 = arith.constant 0 : i32
    %c0_i32_1 = arith.constant 0 : i32
    return %arg0, %c0_i32, %c0_i32_0 : i32, i32, i32
  }
}

</mosaic_0001>

<bundles_post_ra>
// kernel: tpu_custom_call.1
= control target key start
LH: loop header
LB: loop body
LE: loop exit
PB: predicated region body
PF: predicated region fallthrough
CT: control target
= control target key end

     0   :  { %9 = vsyncpa [#allocation3], 0  ;;  %s1245_s0 = inlined_call_operand.vmem [shape: f32[2,4,256], index: 0, kind: input, shape index: {}]   ;;  %s1246_s1 = inlined_call_operand.vmem [shape: f32[32,4], index: 1, kind: input, shape index: {}]   ;;  %s1247_s2 = inlined_call_operand.vmem [shape: f32[32,32], index: 2, kind: input, shape index: {}]   ;;  %s1248_s3 = inlined_call_operand.vmem [shape: f32[32,2], index: 3, kind: input, shape index: {}]   ;;  %s1249_s4 = inlined_call_operand.hbm [shape: f32[2,32,256], index: 4, kind: output, shape index: {}]  }
   0x1   :  { %11 = vsyncpa [#allocation3 + $0x1], 0  ;;  %s1051_s15 = smov 0   ;;  %s1053_s16 = smov 0  }
   0x2   :  { %s1055_s17 = smov 0   ;;  %s1057_s18 = smov 0  }
   0x3 LB: > { %s1072_s19 = sadd.s32 4294967295, %s1018_s18   ;;  %s765_s20 = sadd.s32 4294967294, %s1018_s18   ;;  %s1018_s18 = sphi %s1057_s18, %s1255_s18   ;;  %s1014_s17 = sphi %s1055_s17, %s1254_s17   ;;  %s1010_s16 = sphi %s1053_s16, %s1253_s16   ;;  %s1006_s15 = sphi %s1051_s15, %s1252_s15  }
   0x4   : > { %s1076_s21 = sadd.s32 1, %s1018_s18   ;;  %s113_s22 = sadd.s32 1, %s1014_s17 }
   0x5   : > { %s110_s23 = ssub.s32 %s1018_s18, %s1076_s21  ;;  %p123_p0 = scmp.ne.s32.totalorder %s1014_s17, %s1010_s16 }
   0x6   : > { %p111_p1 = scmp.eq.s32.totalorder %s110_s23, 0  ;;  %p124_p2 = scmp.eq.s32.totalorder %s1072_s19, 1 }
   0x7   : > { %p129_p3 = scmp.ne.s32.totalorder %s1010_s16, %s1006_s15  ;;  %p130_p4 = scmp.eq.s32.totalorder %s765_s20, 1 }
   0x8   : > { %s1087_s24 = scalar_select %p111_p1, %s1014_s17, %s113_s22  }
   0x9   : > { %p1089_p5 = por %p124_p2, %p123_p0  ;;  %p1093_p6 = por %p130_p4, %p129_p3 }
   0xa   : > { %p768_p7 = scmp.ge.s32.totalorder %s1018_s18, 1  ;;  %p165_p8 = scmp.lt.s32.totalorder %s1018_s18, 3 }
   0xc   : > { %p166_p9 = pnand %p768_p7, %p165_p8 }
   0xd   : > { %p191_p10 = scmp.lt.s32.totalorder (!%p166_p9), %s1072_s19, 1  ;;  %v1020_v0 = vmov (!%p166_p9), 0.0   ;;  %vm216_vm0 = vcmask (!%p166_p9), 1043456   ;;  %v196_v3 = vld [vmem:[%s1246_s1] sm:$0xff] (!%p166_p9)  ;;  %vm203_vm1 = vcmask (!%p166_p9), 31744   ;;  %v197_v4 = vld [vmem:[%s1246_s1 + $0x8] sm:$0xff] (!%p166_p9) }
   0xe   : > { %169 = sbr.rel (%p166_p9) target bundleno = 1323 (0x52b), region = 36  ;;  %285 = vmatprep.mubr.f32.mxu0 (!%p166_p9), %v1020_v0  ;;  %v198_v5 = vld [vmem:[%s1246_s1 + $0x10] sm:$0xff] (!%p166_p9)  ;;  %v199_v6 = vld [vmem:[%s1246_s1 + $0x18] sm:$0xff] (!%p166_p9)  ;;  %v322_v19 = vld [vmem:[%s1247_s2] sm:$0xff] (!%p166_p9)  ;;  %vm326_vm2 = vcmask (!%p166_p9), 261120   ;;  %v1021_v20 = vmov (!%p166_p9), 0  }
   0xf   : > { %825 = vmatprep.mubr.msk.f32.mxu1 (!%p166_p9), %vm326_vm2, %v322_v19  ;;  %910 = vset.pattern.permute.xlu1 (!%p166_p9), %v1021_v20  ;;  %v323_v27 = vld [vmem:[%s1247_s2 + $0x8] sm:$0xff] (!%p166_p9)  ;;  %v324_v28 = vld [vmem:[%s1247_s2 + $0x10] sm:$0xff] (!%p166_p9)  ;;  %v325_v29 = vld [vmem:[%s1247_s2 + $0x18] sm:$0xff] (!%p166_p9)  ;;  %s188_s13 = sand.u32 (!%p166_p9), 1, %s1010_s16   ;;  %s800_s22 = sshll.u32 (!%p166_p9), %s1072_s19, 10 }
  0x10   : > { %909 = vset.pattern.permute.xlu0 (!%p166_p9), %v1021_v20  ;;  %s769_s14 = sshll.u32 (!%p166_p9), %s188_s13, 6  ;;  %s1198_s29 = scalar_lea.hbm (!%p166_p9), %s1249_s4, %s800_s22 }
  0x11   : > { %s190_s20 = scalar_lea.vmem (!%p166_p9), [#allocation2], %s769_s14 }
  0x12   : > { %s703_s23 = sshll.u32 (!%p166_p9), %s190_s20, 4  ;;  %s1200_s23 = int_to_ptr.vmem [resolvable:$true] %s703_s23 }
  0x13   : > { %s956_s30 = scalar_lea.vmem (!%p166_p9), %s1200_s23, 1024 }
  0x14   : > { %p957_p11 = scmp.ne.s32.totalorder (!%p166_p9), %s1200_s23, %s956_s30 }
  0x15   : > { %s192_s27 = scalar_select %p191_p10, %s1072_s19, 1 }
  0x16   : > { %s1204_s19 = scalar_lea.sflag [#allocation3], %s188_s13  ;;  %p958_p12 = pnand %p957_p11, %p1089_p5 }
  0x17   : > { %s799_s28 = sshll.u32 %s192_s27, 3 }
  0x18   : > { %s195_s5 = scalar_lea.vmem %s1245_s0, %s799_s28  ;;  %p959_p13 = pneg %p958_p12 }
  0x19   : > { %v200_v1 = vld [vmem:[%s195_s5] sm:$0xff]  ;;  %s1023_s5 = smov [#allocation2]  }
  0x1a   : > { %v202_v2 = vcombine.high %v200_v1, %v200_v1  ;;  %s960_s6 = sshll.u32 %s1023_s5, 4  ;;  %s961_s6 = int_to_ptr.vmem [resolvable:$false] %s960_s6 }
  0x1b   : > { %s962_s7 = scalar_lea.vmem %s961_s6, 2048  ;;  %p963_p0 = scmp.lt.s32.totalorder %s1200_s23, %s961_s6 }
  0x1c   : > { %772 = vmatprep.subr.msk.mxu0 %vm216_vm0, %v202_v2  ;;  %v563_v2 = vld [vmem:[%s1248_s3 + $0x10] sm:$0xff]  ;;  %p964_p1 = scmp.lt.s32.totalorder %s962_s7, %s956_s30 }
  0x1d   : > { %773 = vmatpush1.msk.msra.mxu0 %vm216_vm0, %v200_v1  ;;  %v561_v1 = vld [vmem:[%s1248_s3] sm:$0xff] }
  0x1e   : > { %774 = vmatmul.mubr.msk.f32.vlgmr.msra.gmra.mrb[0].mxu0 %vm203_vm1, %v196_v3  ;;  %p965_p2 = por %p964_p1, %p963_p0 }
  0x1f   : > { %291 = vmatprep.mubr.f32.mxu0 %v1020_v0 }
  0x20   : > { %p966_p3 = pnand %p965_p2, %p959_p13 }
  0x22   : > { %775 = vmatmul.mubr.msk.f32.gmra.mrb[2].mxu0 %vm203_vm1, %v197_v4 }
  0x23   : > { %297 = vmatprep.mubr.f32.mxu0 %v1020_v0 }
  0x26   : > { %776 = vmatmul.mubr.msk.f32.gmra.mrb[4].mxu0 %vm203_vm1, %v198_v5 }
  0x27   : > { %303 = vmatprep.mubr.f32.mxu0 %v1020_v0  ;;  %v1022_v0 = vmov 1  }
  0x2a   : > { %777 = vmatmul.mubr.msk.f32.gmra.mrb[6].mxu0 %vm203_vm1, %v199_v6 }
  0x2b   : > { %839 = vmatprep.mubr.msk.f32.mxu0 %vm326_vm2, %v322_v19 }
  0xf1   : > { %v287_v7 = vpop.f32.mrb[0].mxu0 }
  0xf2   : > { %v289_v8 = vpop.f32.mrb[1].mxu0 }
  0xf3   : > { %v310_v9 = vadd.f32 %v289_v8, %v287_v7 }
  0xf5   : > { %311 = vadd.xlane.f32.xlu0 %v310_v9  ;;  %v293_v10 = vpop.f32.mrb[2].mxu0 }
  0xf6   : > { %v295_v11 = vpop.f32.mrb[3].mxu0 }
  0xf7   : > { %v313_v12 = vadd.f32 %v295_v11, %v293_v10 }
  0xf9   : > { %314 = vadd.xlane.f32.xlu0 %v313_v12  ;;  %v299_v13 = vpop.f32.mrb[4].mxu0  ;;  %v564_v12 = vld [vmem:[%s1248_s3 + $0x18] sm:$0xff] }
  0xfa   : > { %v301_v14 = vpop.f32.mrb[5].mxu0 }
  0xfb   : > { %v316_v15 = vadd.f32 %v301_v14, %v299_v13 }
  0xfd   : > { %317 = vadd.xlane.f32.xlu1 %v316_v15  ;;  %v305_v16 = vpop.f32.mrb[6].mxu0 }
  0xfe   : > { %v307_v17 = vpop.f32.mrb[7].mxu0 }
  0xff   : > { %v319_v18 = vadd.f32 %v307_v17, %v305_v16 }
 0x101   : > { %320 = vadd.xlane.f32.xlu1 %v319_v18 }
 0x182   : > { %v312_v21 = vpop.xlane.xlu0 %311 }
 0x186   : > { %v315_v22 = vpop.xlane.xlu0 %314 }
 0x187   : > { %v845_v23 = vpack.c.bf16 %v315_v22, %v312_v21 }
 0x189   : > { %846 = vmatprep.subr.bf16.mxu1 %v845_v23 }
 0x18a   : > { %848 = vmatpush3.bf16.msra.mxu1 %v845_v23  ;;  %v318_v24 = vpop.xlane.xlu1 %317 }
 0x18e   : > { %v321_v25 = vpop.xlane.xlu1 %320 }
 0x18f   : > { %v849_v26 = vpack.c.bf16 %v321_v25, %v318_v24 }
 0x191   : > { %850 = vmatprep.subr.bf16.mxu1 %v849_v26 }
 0x192   : > { %852 = vmatpush3.bf16.msra.mxu1 %v849_v26 }
 0x195   : > { %826 = vmatmul.mubr.msk.f32.vlgmr.msra.gmra.mrb[0].mxu1 %vm326_vm2, %v323_v27 }
 0x196   : > { %828 = vmatprep.mubr.msk.f32.mxu1 %vm326_vm2, %v324_v28 }
 0x199   : > { %829 = vmatmul.mubr.msk.f32.gmra.mrb[2].mxu1 %vm326_vm2, %v325_v29 }
 0x19a   : > { %842 = vmatprep.mubr.msk.f32.mxu1 %vm326_vm2, %v324_v28 }
 0x268   : > { %v827_v30 = vpop.f32.mrb[0].mxu1 }
 0x269   : > { %431 = vperm.xlu1 %910, %v827_v30   ;;  %v405_v31 = vpop.f32.mrb[1].mxu1 }
 0x26a   : > { %426 = vperm.xlu0 %909, %v405_v31  }
 0x26c   : > { %v830_v32 = vpop.f32.mrb[2].mxu1 }
 0x26d   : > { %v415_v33 = vpop.f32.mrb[3].mxu1 }
 0x26e   : > { %436 = vperm.xlu1 %910, %v415_v33  }
 0x272   : > { %441 = vperm.xlu1 %910, %v830_v32  }
 0x276   : > { %911 = vset.pattern.permute.xlu1 %v1022_v0 }
 0x2e8   : > { %v432_v34 = vpop.permute.xlu1 %431 }
 0x2e9   : > { %v1136_v35 = vsub.f32 %v293_v10, %v432_v34  ;;  %v1138_v36 = vsub.f32 %v295_v11, %v432_v34  ;;  %v427_v37 = vpop.permute.xlu0 %426  ;;  %v562_v11 = vld [vmem:[%s1248_s3 + $0x8] sm:$0xff] }
 0x2ea   : > { %v1140_v38 = vsub.f32 %v287_v7, %v427_v37  ;;  %v1142_v39 = vsub.f32 %v289_v8, %v427_v37 }
 0x2eb   : > { %v454_v40 = vmul.f32 %v1136_v35, %v1136_v35  ;;  %v455_v41 = vmul.f32 %v1138_v36, %v1138_v36 }
 0x2ec   : > { %v452_v42 = vmul.f32 %v1140_v38, %v1140_v38  ;;  %v453_v43 = vmul.f32 %v1142_v39, %v1142_v39 }
 0x2ed   : > { %v437_v44 = vpop.permute.xlu1 %436  ;;  %v463_v45 = vadd.f32 %v455_v41, %v454_v40 }
 0x2ee   : > { %v1152_v46 = vsub.f32 %v299_v13, %v437_v44  ;;  %v1154_v47 = vsub.f32 %v301_v14, %v437_v44  ;;  %v460_v48 = vadd.f32 %v453_v43, %v452_v42 }
 0x2ef   : > { %464 = vadd.xlane.f32.xlu0 %v463_v45 }
 0x2f0   : > { %461 = vadd.xlane.f32.xlu1 %v460_v48  ;;  %v456_v49 = vmul.f32 %v1152_v46, %v1152_v46  ;;  %v457_v50 = vmul.f32 %v1154_v47, %v1154_v47 }
 0x2f1   : > { %v442_v51 = vpop.permute.xlu1 %441 }
 0x2f2   : > { %v1160_v52 = vsub.f32 %v305_v16, %v442_v51  ;;  %v1162_v53 = vsub.f32 %v307_v17, %v442_v51  ;;  %v466_v54 = vadd.f32 %v457_v50, %v456_v49 }
 0x2f4   : > { %467 = vadd.xlane.f32.xlu1 %v466_v54  ;;  %v458_v55 = vmul.f32 %v1160_v52, %v1160_v52  ;;  %v459_v56 = vmul.f32 %v1162_v53, %v1162_v53 }
 0x2f6   : > { %v469_v57 = vadd.f32 %v459_v56, %v458_v55 }
 0x2f8   : > { %470 = vadd.xlane.f32.xlu1 %v469_v57 }
 0x309   : > { %599 = vperm.xlu1 %911, %v561_v1  }
 0x30d   : > { %609 = vperm.xlu1 %911, %v563_v2  }
 0x311   : > { %913 = vset.pattern.permute.xlu1 %v1021_v20 }
 0x37c   : > { %v465_v58 = vpop.xlane.xlu0 %464 }
 0x37d   : > { %v462_v59 = vpop.xlane.xlu1 %461 }
 0x37e   : > { %v853_v60 = vpack.c.bf16 %v465_v58, %v462_v59 }
 0x380   : > { %854 = vmatprep.subr.bf16.mxu0 %v853_v60  ;;  %861 = vmatprep.subr.bf16.mxu1 %v853_v60 }
 0x381   : > { %856 = vmatpush3.bf16.msra.mxu0 %v853_v60  ;;  %863 = vmatpush3.bf16.msra.mxu1 %v853_v60  ;;  %v468_v61 = vpop.xlane.xlu1 %467 }
 0x385   : > { %v471_v62 = vpop.xlane.xlu1 %470 }
 0x386   : > { %v857_v63 = vpack.c.bf16 %v471_v62, %v468_v61 }
 0x388   : > { %858 = vmatprep.subr.bf16.mxu0 %v857_v63  ;;  %862 = vmatprep.subr.bf16.mxu1 %v857_v63 }
 0x389   : > { %860 = vmatpush3.bf16.msra.mxu0 %v857_v63  ;;  %864 = vmatpush3.bf16.msra.mxu1 %v857_v63  ;;  %v600_v21 = vpop.permute.xlu1 %599 }
 0x38c   : > { %840 = vmatmul.mubr.msk.f32.vlgmr.msra.gmra.mrb[8].mxu0 %vm326_vm2, %v323_v27  ;;  %843 = vmatmul.mubr.msk.f32.vlgmr.msra.gmra.mrb[4].mxu1 %vm326_vm2, %v325_v29 }
 0x38d   : > { %v610_v22 = vpop.permute.xlu1 %609 }
 0x45f   : > { %v841_v3 = vpop.f32.mrb[8].mxu0  ;;  %v844_v4 = vpop.f32.mrb[4].mxu1 }
 0x460   : > { %v544_v5 = vadd.f32 1e-05, %v841_v3  ;;  %v554_v6 = vadd.f32 1e-05, %v844_v4  ;;  %v548_v7 = vpop.f32.mrb[5].mxu1  ;;  %v538_v8 = vpop.f32.mrb[9].mxu0 }
 0x461   : > { %v539_v9 = vadd.f32 1e-05, %v538_v8  ;;  %v549_v10 = vadd.f32 1e-05, %v548_v7 }
 0x462   : > { %916 = vrsqrt.f32 %v544_v5 }
 0x463   : > { %918 = vrsqrt.f32 %v554_v6 }
 0x464   : > { %920 = vrsqrt.f32 %v539_v9 }
 0x465   : > { %922 = vrsqrt.f32 %v549_v10 }
 0x46c   : > { %v917_v13 = vpop.eup %916 }
 0x46d   : > { %v919_v14 = vpop.eup %918  ;;  %v566_v15 = vmul.f32 %v917_v13, %v562_v11 }
 0x46e   : > { %v568_v16 = vmul.f32 %v919_v14, %v564_v12  ;;  %v921_v17 = vpop.eup %920 }
 0x46f   : > { %576 = vperm.xlu0 %909, %v566_v15   ;;  %v565_v18 = vmul.f32 %v921_v17, %v561_v1  ;;  %v923_v19 = vpop.eup %922 }
 0x470   : > { %586 = vperm.xlu1 %913, %v568_v16   ;;  %v567_v20 = vmul.f32 %v923_v19, %v563_v2 }
 0x473   : > { %912 = vset.pattern.permute.xlu0 %v1022_v0 }
 0x474   : > { %571 = vperm.xlu1 %913, %v565_v18   ;;  %604 = vperm.xlu0 %912, %v562_v11  }
 0x478   : > { %581 = vperm.xlu1 %913, %v567_v20  }
 0x47c   : > { %914 = vset.pattern.permute.xlu1 %v1022_v0 }
 0x47d   : > { %614 = vperm.xlu1 %914, %v564_v12  }
 0x4ee   : > { %v577_v23 = vpop.permute.xlu0 %576 }
 0x4ef   : > { %v587_v24 = vpop.permute.xlu1 %586  ;;  %v591_v25 = vmul.f32 %v577_v23, %v1136_v35  ;;  %v592_v26 = vmul.f32 %v577_v23, %v1138_v36 }
 0x4f3   : > { %v572_v27 = vpop.permute.xlu1 %571  ;;  %v605_v28 = vpop.permute.xlu0 %604 }
 0x4f4   : > { %v589_v29 = vmul.f32 %v572_v27, %v1140_v38  ;;  %v590_v30 = vmul.f32 %v572_v27, %v1142_v39  ;;  %v619_v31 = vadd.f32 %v605_v28, %v591_v25  ;;  %v620_v32 = vadd.f32 %v605_v28, %v592_v26 }
 0x4f5   : > { %v595_v38 = vmul.f32 %v587_v24, %v1160_v52  ;;  %v596_v39 = vmul.f32 %v587_v24, %v1162_v53 }
 0x4f6   : > { %v617_v33 = vadd.f32 %v600_v21, %v589_v29  ;;  %v618_v34 = vadd.f32 %v600_v21, %v590_v30  ;;  %v788_v37 = vmul.f32 -1.442695, %v619_v31  ;;  %v789_v40 = vmul.f32 -1.442695, %v620_v32 }
 0x4f7   : > { %v582_v41 = vpop.permute.xlu1 %581 }
 0x4f8   : > { %v786_v42 = vmul.f32 -1.442695, %v617_v33  ;;  %v787_v43 = vmul.f32 -1.442695, %v618_v34  ;;  %924 = vpow2.f32 %v788_v37  ;;  %v593_v35 = vmul.f32 %v582_v41, %v1152_v46 }
 0x4f9   : > { %926 = vpow2.f32 %v789_v40  ;;  %v594_v36 = vmul.f32 %v582_v41, %v1154_v47 }
 0x4fa   : > { %928 = vpow2.f32 %v786_v42  ;;  %v621_v44 = vadd.f32 %v610_v22, %v593_v35 }
 0x4fb   : > { %930 = vpow2.f32 %v787_v43  ;;  %v622_v45 = vadd.f32 %v610_v22, %v594_v36 }
 0x4fc   : > { %v790_v48 = vmul.f32 -1.442695, %v621_v44  ;;  %v615_v49 = vpop.permute.xlu1 %614 }
 0x4fd   : > { %v791_v50 = vmul.f32 -1.442695, %v622_v45  ;;  %v623_v51 = vadd.f32 %v615_v49, %v595_v38  ;;  %v624_v54 = vadd.f32 %v615_v49, %v596_v39 }
 0x4fe   : > { %932 = vpow2.f32 %v790_v48 }
 0x4ff   : > { %934 = vpow2.f32 %v791_v50  ;;  %v792_v55 = vmul.f32 -1.442695, %v623_v51  ;;  %v793_v46 = vmul.f32 -1.442695, %v624_v54 }
 0x501   : > { %936 = vpow2.f32 %v792_v55 }
 0x502   : > { %v925_v47 = vpop.eup %924  ;;  %938 = vpow2.f32 %v793_v46 }
 0x503   : > { %v927_v56 = vpop.eup %926  ;;  %v651_v57 = vadd.f32 1.0, %v925_v47 }
 0x504   : > { %v929_v52 = vpop.eup %928  ;;  %v652_v58 = vadd.f32 1.0, %v927_v56 }
 0x505   : > { %v931_v53 = vpop.eup %930  ;;  %v649_v59 = vadd.f32 1.0, %v929_v52  ;;  %940 = vrcp.f32 %v651_v57 }
 0x506   : > { %v650_v60 = vadd.f32 1.0, %v931_v53  ;;  %942 = vrcp.f32 %v652_v58 }
 0x507   : > { %944 = vrcp.f32 %v649_v59 }
 0x508   : > { %v933_v61 = vpop.eup %932  ;;  %946 = vrcp.f32 %v650_v60 }
 0x509   : > { %v935_v62 = vpop.eup %934  ;;  %v653_v63 = vadd.f32 1.0, %v933_v61 }
 0x50a   : > { %v654_v0 = vadd.f32 1.0, %v935_v62 }
 0x50b   : > { %v937_v1 = vpop.eup %936  ;;  %948 = vrcp.f32 %v653_v63 }
 0x50c   : > { %v939_v2 = vpop.eup %938  ;;  %950 = vrcp.f32 %v654_v0  ;;  %v655_v3 = vadd.f32 1.0, %v937_v1 }
 0x50d   : > { %v656_v4 = vadd.f32 1.0, %v939_v2 }
 0x50e   : > { %952 = vrcp.f32 %v655_v3 }
 0x50f   : > { %v941_v5 = vpop.eup %940  ;;  %954 = vrcp.f32 %v656_v4 }
 0x510   : > { %v943_v6 = vpop.eup %942  ;;  %v675_v7 = vmul.f32 %v941_v5, %v619_v31 }
 0x511   : > { %v945_v8 = vpop.eup %944  ;;  %v676_v9 = vmul.f32 %v943_v6, %v620_v32 }
 0x512   : > { %v947_v10 = vpop.eup %946  ;;  %v673_v11 = vmul.f32 %v945_v8, %v617_v33  ;;  %683 = vst [vmem:[%s190_s20 + $0x10] sm:$0xff] %v675_v7 }
 0x513   : > { %v674_v12 = vmul.f32 %v947_v10, %v618_v34  ;;  %684 = vst [vmem:[%s190_s20 + $0x18] sm:$0xff] %v676_v9 }
 0x514   : > { %681 = vst [vmem:[%s190_s20] sm:$0xff] %v673_v11 }
 0x515   : > { %v949_v13 = vpop.eup %948  ;;  %682 = vst [vmem:[%s190_s20 + $0x8] sm:$0xff] %v674_v12 }
 0x516   : > { %v951_v14 = vpop.eup %950  ;;  %v677_v15 = vmul.f32 %v949_v13, %v621_v44 }
 0x517   : > { %v678_v16 = vmul.f32 %v951_v14, %v622_v45 }
 0x518   : > { %v953_v17 = vpop.eup %952  ;;  %685 = vst [vmem:[%s190_s20 + $0x20] sm:$0xff] %v677_v15 }
 0x519   : > { %v955_v18 = vpop.eup %954  ;;  %686 = vst [vmem:[%s190_s20 + $0x28] sm:$0xff] %v678_v16  ;;  %v679_v19 = vmul.f32 %v953_v17, %v623_v51 }
 0x51a   : > { %v680_v20 = vmul.f32 %v955_v18, %v624_v54 }
 0x51b   : > { %687 = vst [vmem:[%s190_s20 + $0x30] sm:$0xff] %v679_v19 }
 0x51c   : > { %688 = vst [vmem:[%s190_s20 + $0x38] sm:$0xff] %v680_v20 }
 0x51d   : > { %969 = shalt.err (!%p966_p3)
}
 0x51e   : > { %s970_s8 = scalar_lea.hbm %s1198_s29, 1024  ;;  %s974_s11 = scalar_lea.hbm %s1249_s4, 2048 }
 0x51f   : > { %p971_p4 = scmp.ne.s32.totalorder %s1198_s29, %s970_s8  ;;  %p975_p9 = scmp.lt.u32.totalorder %s1198_s29, %s1249_s4 }
 0x520   : > { %p976_p10 = scmp.lt.u32.totalorder %s974_s11, %s970_s8  ;;  %p978_p12 = scmp.lt.u32.totalorder %s970_s8, %s1198_s29 }
 0x521   : > { %p972_p7 = pnand %p971_p4, %p1089_p5 }
 0x522   : > { %p977_p11 = por %p976_p10, %p975_p9 }
 0x523   : > { %p973_p8 = pneg %p972_p7 }
 0x524   : > { %p979_p13 = por %p978_p12, %p977_p11 }
 0x526   : > { %p980_p0 = pnand %p979_p13, %p973_p8 }
 0x528   : > { %983 = shalt.err (!%p980_p0)
}
 0x529   : > { %s1024_s14 = smov 256   ;;  %s1025_s20 = smov 16  }
 0x52a   : > { %865 = dma.vmem_to_hbm [thread:$0]  (%p1089_p5), %s1200_s23, 1024, %s1198_s29, %s1204_s19, %s1024_s14, %s1024_s14, %s1025_s20  }
 0x52b PF: > { %p871_p1 = scmp.ge.s32.totalorder %s1018_s18, 2  ;;  %s718_s22 = sand.u32 1, %s1006_s15  }
 0x52c   : > { %s719_s27 = scalar_lea.sflag [#allocation3], %s718_s22 }
 0x52d   : > { %p868_p2 = pnand %p871_p1, %p1093_p6 }
 0x52f   : > { %1001 = dma.done.wait (!%p868_p2), %s719_s27, 1024  }
 0x530   : > { %1003 = vsyncadd (!%p868_p2), %s719_s27, 4294966272  ;;  %p14_p3 = scmp.ge.s32.totalorder %s1076_s21, 4   ;;  %s1252_s15 = smov %s1010_s16 }
 0x531   : > { %s1253_s16 = smov %s1014_s17  ;;  %s1254_s17 = smov %s1087_s24 }
 0x532   : > { %s1255_s18 = smov %s1076_s21  ;;  %16 = sbr.rel (!%p14_p3) target bundleno = 3 (0x3), region = 71 }
 0x539   :  { %724 = vsyncpa [#allocation3], 1 }
 0x53a   :  { %726 = vsyncpa [#allocation3 + $0x1], 1 }

</bundles_post_ra>
